<compile_context>
chip_gen: v7x
topology: tpu7x:2x2x1
jax: 0.10.0
libtpu: 0.0.40
codegen_flags: <defaults>
</compile_context>

<pallas_src>
import jax
import jax.numpy as jnp
from jax import lax
from jax.experimental import pallas as pl
from jax.experimental.pallas import tpu as pltpu

_LANES = 128                      # vreg lane width
_SUBLANES = 8                     # f32 sublanes per vreg (one full row group)
_MAX_UNROLLED_FEATURES = 256      # above this, use a rolled fori_loop
_VMEM_BUDGET_BYTES = 24 * 1024 * 1024   # target for double-buffered tiles
_VMEM_LIMIT_BYTES = 48 * 1024 * 1024    # < v7x's 64 MiB physical VMEM


def _cdiv(a: int, b: int) -> int:
    return -(-a // b)


def _round_up(n: int, m: int) -> int:
    return _cdiv(n, m) * m


def linear_kernel(x_ref, w_ref, b_ref, o_ref):
    """One lane-dense batch tile of y = w . x + b.

    x_ref: (F, TB) f32 VMEM -- feature-major: batch on the 128-lane axis
    w_ref: (F, 1)  f32 VMEM -- weight column, lane-broadcast in the multiply
    b_ref: (1,)    f32 SMEM -- bias scalar
    o_ref: (1, TB) f32 VMEM -- lane-dense output row (unmasked vst)
    """
    n_feat, tb = x_ref.shape

    if n_feat <= _MAX_UNROLLED_FEATURES:
        # Small/moderate F: statically unrolled loop over 8-feature (one
        # sublane-group) slabs.  Every multiply is a single broadcast op over
        # the (fb, TB) slab (full (8,128) vregs for F >= 8); each slab is
        # reduced independently on the XLU, so there is no long serial VALU
        # accumulation chain.
        partials = []
        for f0 in range(0, n_feat, _SUBLANES):
            fb = min(_SUBLANES, n_feat - f0)
            slab = x_ref[f0:f0 + fb, :] * w_ref[f0:f0 + fb, :]       # VPU
            partials.append(jnp.sum(slab, axis=0, keepdims=True))    # XLU
        # Pairwise tree over the (few) independent partials.
        while len(partials) > 1:
            nxt = [partials[i] + partials[i + 1]
                   for i in range(0, len(partials) - 1, 2)]
            if len(partials) % 2:
                nxt.append(partials[-1])
            partials = nxt
        o_ref[...] = partials[0] + b_ref[0]
    else:
        # Large F: rolled loop over full 8-feature slabs keeps code size and
        # compile time bounded.  The (8, TB) accumulator spans TB/128
        # independent vregs per add, which hides the loop-carried latency.
        n_full = n_feat // _SUBLANES

        def body(c, acc):
            f0 = pl.multiple_of(c * _SUBLANES, _SUBLANES)
            sl = pl.ds(f0, _SUBLANES)
            return acc + x_ref[sl, :] * w_ref[sl, :]

        acc = lax.fori_loop(0, n_full, body,
                            jnp.zeros((_SUBLANES, tb), jnp.float32), unroll=8)
        out = jnp.sum(acc, axis=0, keepdims=True)
        rem = n_feat - n_full * _SUBLANES
        if rem:
            tail = x_ref[n_full * _SUBLANES:, :] * w_ref[n_full * _SUBLANES:, :]
            out = out + jnp.sum(tail, axis=0, keepdims=True)
        o_ref[...] = out + b_ref[0]


def _choose_batch_tile(batch: int, n_feature: int) -> int:
    """Largest 128-aligned batch tile within the VMEM budget, keeping >= 2 grid
    steps when the batch allows it (v7x has 2 TensorCores; harmless on v5e/v6e).
    """
    f_pad = _round_up(max(n_feature, 1), _SUBLANES)   # sublane-padded VMEM rows
    # Double-buffered x tile + double-buffered output row, 4 B per f32 lane.
    bytes_per_lane = 2 * f_pad * 4 + 2 * 4
    tb = max(_LANES,
             (_VMEM_BUDGET_BYTES // bytes_per_lane) // _LANES * _LANES)
    tb = min(tb, _round_up(batch, _LANES))
    if batch > _LANES:
        tb = min(tb, _round_up(_cdiv(batch, 2), _LANES))
    return tb


@jax.jit
def linear_net_forward_feature_major(x_fm, w, b):
    """y = W @ x_fm + b with x_fm already feature-major: (n_feature, batch).

    This is the lane-dense layout the kernel wants; produce x in this layout
    upstream (dataset load / persistent buffer) to avoid a per-call transpose.
    Returns y with shape (batch, 1), matching nn.Linear(n_feature, 1).
    """
    n_feature, batch = x_fm.shape
    assert w.shape == (1, n_feature)
    assert b.shape == (1,)

    if x_fm.dtype != jnp.float32:
        x_fm = x_fm.astype(jnp.float32)
    w_col = w.reshape(n_feature, 1).astype(jnp.float32)
    b_vec = b.reshape(1).astype(jnp.float32)

    tb = _choose_batch_tile(batch, n_feature)
    grid = (_cdiv(batch, tb),)      # ragged last tile is masked by Pallas

    out_row = pl.pallas_call(
        linear_kernel,
        out_shape=jax.ShapeDtypeStruct((1, batch), jnp.float32),
        grid=grid,
        in_specs=[
            # x tile: full feature extent (sublanes) x TB lanes, auto
            # double-buffered over the batch axis.
            pl.BlockSpec((n_feature, tb), lambda i: (0, i)),
            # Weight column in VMEM (constant block index -> fetched once).
            pl.BlockSpec((n_feature, 1), lambda i: (0, 0)),
            # Bias stays as an SMEM scalar.
            pl.BlockSpec(memory_space=pltpu.MemorySpace.SMEM),
        ],
        out_specs=pl.BlockSpec((1, tb), lambda i: (0, i)),
        compiler_params=pltpu.CompilerParams(
            dimension_semantics=("parallel",),   # both TCs on v7x
            vmem_limit_bytes=_VMEM_LIMIT_BYTES,  # under v7x's 64 MiB ceiling
        ),
        cost_estimate=pl.CostEstimate(
            flops=2 * batch * n_feature,
            transcendentals=0,
            bytes_accessed=batch * n_feature * 4 + batch * 4
            + (n_feature + 1) * 4,
        ),
    )(x_fm, w_col, b_vec)

    # (1, batch) -> (batch, 1): identical row-major layout, so this reshape is
    # metadata-only.  Nothing was padded, so nothing is sliced off.
    return out_row.reshape(batch, 1)


@jax.jit
def linear_net_forward(x, w, b):
    """LinearNet.forward: x (batch, n_feature) -> y = x @ W.T + b, (batch, 1).

    The transpose to feature-major layout is the single remaining wrapper-side
    copy; call `linear_net_forward_feature_major` directly when x is produced
    feature-major upstream to eliminate it.
    """
    return linear_net_forward_feature_major(x.T, w, b)


if __name__ == "__main__":
    key = jax.random.PRNGKey(0)
    kx, kw, kb = jax.random.split(key, 3)

    batch = 300       # not a multiple of 128: exercises the masked ragged tile
    n_feature = 3     # small-F linear regression (not a multiple of 8 either)

    x = jax.random.normal(kx, (batch, n_feature), dtype=jnp.float32)
    # nn.Linear(n_feature, 1) parameter shapes: W (1, F), b (1,)
    w = jax.random.normal(kw, (1, n_feature), dtype=jnp.float32) * 0.01
    b = jax.random.normal(kb, (1,), dtype=jnp.float32) * 0.01

    y = linear_net_forward(x, w, b)
    jax.block_until_ready(y)

    # Reference check in plain JAX (same semantics as PyTorch nn.Linear).
    y_ref = x @ w.T + b
    assert y.shape == (batch, 1)
    assert jnp.allclose(y, y_ref, atol=1e-5, rtol=1e-5)

    print("KERNEL_OK")
</pallas_src>

<mosaic_0001>
module attributes {stable_mosaic.version = 11 : i64} {
  func.func @linear_kernel(%arg0: i32, %arg1: memref<3x256xf32, #tpu.memory_space<vmem>>, %arg2: memref<3x1xf32, #tpu.memory_space<vmem>>, %arg3: memref<1xf32, #tpu.memory_space<smem>>, %arg4: memref<1x256xf32, #tpu.memory_space<vmem>>) attributes {dimension_semantics = [#tpu.dimension_semantics<parallel>], iteration_bounds = array<i64: 2>, scalar_prefetch = 0 : i64, scratch_operands = 0 : i64, tpu.core_type = #tpu.core_type<tc>, window_params = [{transform_indices = @transform_0, window_bounds = array<i64: 3, 256>}, {pipeline_mode = #tpu.pipeline_mode<synchronous>, transform_indices = @transform_1, window_bounds = array<i64: 3, 1>}, {transform_indices = @transform_2, window_bounds = array<i64: 1>}, {transform_indices = @transform_3, window_bounds = array<i64: 1, 256>}]} {
    %c0 = arith.constant 0 : index
    %c0_0 = arith.constant 0 : index
    %0 = vector.load %arg1[%c0, %c0_0] : memref<3x256xf32, #tpu.memory_space<vmem>>, vector<3x256xf32>
    %c0_1 = arith.constant 0 : index
    %c0_2 = arith.constant 0 : index
    %1 = vector.load %arg2[%c0_1, %c0_2] : memref<3x1xf32, #tpu.memory_space<vmem>>, vector<3x1xf32>
    %2 = vector.broadcast %1 : vector<3x1xf32> to vector<3x256xf32>
    %3 = arith.mulf %0, %2 : vector<3x256xf32>
    %cst = arith.constant dense<0.000000e+00> : vector<256xf32>
    %4 = vector.multi_reduction <add>, %3, %cst [0] : vector<3x256xf32> to vector<256xf32>
    %5 = vector.shape_cast %4 : vector<256xf32> to vector<1x256xf32>
    %c0_3 = arith.constant 0 : index
    %6 = memref.load %arg3[%c0_3] : memref<1xf32, #tpu.memory_space<smem>>
    %7 = vector.broadcast %6 : f32 to vector<1x256xf32>
    %8 = arith.addf %5, %7 : vector<1x256xf32>
    %c0_4 = arith.constant 0 : index
    %c0_5 = arith.constant 0 : index
    %9 = vector.load %arg4[%c0_4, %c0_5] : memref<1x256xf32, #tpu.memory_space<vmem>>, vector<1x256xf32>
    tpu.vector_store %arg4[%c0_4, %c0_5], %8 {strides = array<i32>} : memref<1x256xf32, #tpu.memory_space<vmem>>, vector<1x256xf32>,
    return
  }
  func.func @transform_0(%arg0: i32) -> (i32, i32) {
    %c0_i32 = arith.constant 0 : i32
    %c0_i32_0 = arith.constant 0 : i32
    return %c0_i32, %arg0 : i32, i32
  }
  func.func @transform_1(%arg0: i32) -> (i32, i32) {
    %c0_i32 = arith.constant 0 : i32
    %c0_i32_0 = arith.constant 0 : i32
    %c0_i32_1 = arith.constant 0 : i32
    return %c0_i32, %c0_i32_0 : i32, i32
  }
  func.func @transform_2(%arg0: i32) -> i32 {
    %c0_i32 = arith.constant 0 : i32
    %c0_i32_0 = arith.constant 0 : i32
    return %c0_i32 : i32
  }
  func.func @transform_3(%arg0: i32) -> (i32, i32) {
    %c0_i32 = arith.constant 0 : i32
    %c0_i32_0 = arith.constant 0 : i32
    return %c0_i32, %arg0 : i32, i32
  }
}

</mosaic_0001>

<bundles_post_ra>
// kernel: linear_net_forward_feature_major.1
= control target key start
LH: loop header
LB: loop body
LE: loop exit
PB: predicated region body
PF: predicated region fallthrough
CT: control target
= control target key end

     0   :  { %s602_s0 = inlined_call_operand.vmem [shape: f32[3,300], index: 0, kind: input, shape index: {}]   ;;  %s603_s1 = inlined_call_operand.vmem [shape: f32[3,1], index: 1, kind: input, shape index: {}]   ;;  %s604_s2 = inlined_call_operand.<no memory space> [shape: f32[1], index: 2, kind: input, shape index: {}]   ;;  %s605_s3 = inlined_call_operand.hbm [shape: f32[1,300], index: 3, kind: output, shape index: {}]  }
   0x1   :  { %8 = sst [smem:[#allocation2]] %s604_s2 }
   0x2   :  { %9 = vsyncpa [#allocation4], 0 }
   0x3   :  { %11 = vsyncpa [#allocation4 + $0x1], 0  ;;  %s484_s14 = smov 0   ;;  %s486_s15 = smov 0  }
   0x4   :  { %s488_s16 = smov 0   ;;  %s490_s17 = smov 0  }
   0x5 LB: > { %s505_s2 = sadd.s32 4294967295, %s455_s17   ;;  %s336_s18 = sadd.s32 4294967294, %s455_s17   ;;  %s455_s17 = sphi %s490_s17, %s611_s17   ;;  %s451_s16 = sphi %s488_s16, %s610_s16   ;;  %s447_s15 = sphi %s486_s15, %s609_s15   ;;  %s443_s14 = sphi %s484_s14, %s608_s14  }
   0x6   : > { %s509_s19 = sadd.s32 1, %s455_s17   ;;  %s92_s20 = sadd.s32 1, %s451_s16 }
   0x7   : > { %s89_s21 = ssub.s32 %s455_s17, %s509_s19  ;;  %p102_p0 = scmp.ne.s32.totalorder %s451_s16, %s447_s15 }
   0x8   : > { %p90_p1 = scmp.eq.s32.totalorder %s89_s21, 0  ;;  %p103_p2 = scmp.eq.s32.totalorder %s505_s2, 1 }
   0x9   : > { %p108_p3 = scmp.ne.s32.totalorder %s447_s15, %s443_s14  ;;  %p109_p4 = scmp.eq.s32.totalorder %s336_s18, 1 }
   0xa   : > { %s520_s22 = scalar_select %p90_p1, %s451_s16, %s92_s20  }
   0xb   : > { %p522_p5 = por %p103_p2, %p102_p0  ;;  %p526_p6 = por %p109_p4, %p108_p3 }
   0xc   : > { %p339_p7 = scmp.ge.s32.totalorder %s455_s17, 1  ;;  %p150_p8 = scmp.lt.s32.totalorder %s455_s17, 3 }
   0xe   : > { %p151_p9 = pnand %p339_p7, %p150_p8 }
   0xf   : > { %v198_v0 = vld [vmem:[%s603_s1] sm:$0x7] (!%p151_p9)  ;;  %v457_v1 = vmov (!%p151_p9), 0   ;;  %s175_s27 = sand.u32 (!%p151_p9), 1, %s447_s15   ;;  %s537_s28 = sshll.u32 (!%p151_p9), %s505_s2, 1  ;;  %v206_v4 = vlaneseq (!%p151_p9)  ;;  %vm215_vm0 = vcmask (!%p151_p9), 1042432  }
  0x10   : > { %154 = sbr.rel (%p151_p9) target bundleno = 200 (0xc8), region = 32  ;;  %392 = vset.pattern.permute.xlu0 (!%p151_p9), %v457_v1  ;;  %p183_p10 = scmp.lt.s32.totalorder (!%p151_p9), %s537_s28, 2  ;;  %v458_v2 = vmov (!%p151_p9), 839922192   ;;  %v459_v20 = vmov (!%p151_p9), 1966171168  }
  0x11   : > { %201 = vperm.xlu0 (!%p151_p9), %392, %v198_v0   ;;  %v204_v3 = vunpack.c.l.s4 (!%p151_p9), %v458_v2  ;;  %v207_v6 = vshrl.u32 (!%p151_p9), %v206_v4, 7  ;;  %s230_s7 = sld [smem:[#allocation2]] (!%p151_p9)  ;;  %v238_v21 = vunpack.c.l.s4 (!%p151_p9), %v459_v20  ;;  %s340_s8 = sshll.u32 (!%p151_p9), %s175_s27, 1  ;;  %vm254_vm1 = vcmp.lt.s32.totalorder (!%p151_p9), %v206_v4, 256 }
  0x12   : > { %s177_s9 = scalar_lea.vmem (!%p151_p9), [#allocation3], %s340_s8  ;;  %s548_s10 = scalar_lea.sflag (!%p151_p9), [#allocation4], %s175_s27 }
  0x13   : > { %v205_v5 = vunpack.c.0.s8 (!%p151_p9), %v204_v3  ;;  %v239_v26 = vunpack.c.0.s8 (!%p151_p9), %v238_v21 }
  0x15   : > { %v208_v7 = vsub.s32 (!%p151_p9), %v205_v5, %v207_v6  ;;  %v242_v31 = vsub.s32 (!%p151_p9), %v239_v26, %v207_v6 }
  0x17   : > { %s184_s29 = scalar_select %p183_p10, %s537_s28, 2  ;;  %v231_v29 = vstv %s230_s7 }
  0x18   : > { %s266_s11 = ssub.s32 (%p522_p5), 3, %s537_s28 }
  0x19   : > { %s342_s30 = sshll.u32 %s184_s29, 2  ;;  %p267_p11 = scmp.lt.s32.totalorder (%p522_p5), %s266_s11, 2 }
  0x1a   : > { %s186_s6 = scalar_lea.vmem %s602_s0, %s342_s30 }
  0x1b   : > { %v197_v9 = vld [vmem:[%s186_s6] sm:$0x77] }
  0x90   : > { %v202_v8 = vpop.permute.xlu0 %201 }
  0x91   : > { %v209_v10 = vrot.slane %v202_v8, %v208_v7 }
  0x93   : > { %v211_v11 = vmul.f32 %v209_v10, %v197_v9 }
  0x95   : > { %v213_v12 = vcombine.high %v211_v11, %v211_v11  ;;  %v216_v13 = vsel %vm215_vm0, %v211_v11, 0.0 }
  0x96   : > { %v217_v14 = vrot.slane %v216_v13, 4 }
  0x97   : > { %v223_v15 = vsel %vm215_vm0, %v213_v12, 0.0 }
  0x98   : > { %v218_v16 = vadd.f32 %v217_v14, %v216_v13  ;;  %v224_v17 = vrot.slane %v223_v15, 4 }
  0x9a   : > { %v219_v18 = vrot.slane %v218_v16, 2  ;;  %v225_v19 = vadd.f32 %v224_v17, %v223_v15 }
  0x9c   : > { %v220_v22 = vadd.f32 %v219_v18, %v218_v16  ;;  %v226_v23 = vrot.slane %v225_v19, 2 }
  0x9e   : > { %v221_v24 = vrot.slane %v220_v22, 1  ;;  %v227_v25 = vadd.f32 %v226_v23, %v225_v19 }
  0xa0   : > { %v222_v27 = vadd.f32 %v221_v24, %v220_v22  ;;  %v228_v28 = vrot.slane %v227_v25, 1 }
  0xa2   : > { %v229_v30 = vadd.f32 %v228_v28, %v227_v25  ;;  %v232_v32 = vadd.f32 %v231_v29, %v222_v27 }
  0xa4   : > { %v233_v33 = vadd.f32 %v231_v29, %v229_v30 }
  0xa6   : > { %v236_v34 = vcombine.low %v232_v32, %v233_v33  ;;  %264 = sbr.rel (!%p522_p5) target bundleno = 200 (0xc8), region = 36 }
  0xa8   : > { %v243_v35 = vrot.slane %v236_v34, %v242_v31 }
  0xaa   : > { %v250_v36 = vrot.slane %v243_v35, %v242_v31 }
  0xac   : > { %256 = vst.msk [vmem:[%s177_s9] sm:$0x3] %vm254_vm1, %v250_v36 }
  0xad   : > { %s613_s11 = smov (!%p267_p11, %s266_s11), 2 }
  0xae   : > { %s553_s12 = sshll.u32 %s613_s11, 4 }
  0xaf   : > { %s271_s13 = ssub.s32 32, %s553_s12 }
  0xb0   : > { %272 = vsyncadd %s548_s10, %s271_s13  ;;  %p346_p12 = scmp.ne.s32.totalorder %s553_s12, 0  ;;  %s350_s18 = sshll.u32 %s505_s2, 5 }
  0xb1   : > { %s562_s23 = scalar_lea.hbm %s605_s3, %s350_s18  ;;  %s277_s25 = sshll.u32 %s177_s9, 4  ;;  %s278_s25 = int_to_ptr.vmem [resolvable:$true] %s277_s25 }
  0xb2   : > { %s393_s26 = scalar_lea.vmem %s278_s25, %s553_s12  ;;  %s460_s27 = smov [#allocation3]  }
  0xb3   : > { %p394_p13 = scmp.ne.s32.totalorder %s278_s25, %s393_s26  ;;  %s397_s28 = sshll.u32 %s460_s27, 4  ;;  %s398_s28 = int_to_ptr.vmem [resolvable:$false] %s397_s28 }
  0xb4   : > { %s399_s29 = scalar_lea.vmem %s398_s28, 64  ;;  %p400_p2 = scmp.lt.s32.totalorder %s278_s25, %s398_s28 }
  0xb5   : > { %p395_p0 = pnand %p394_p13, %p346_p12  ;;  %p401_p3 = scmp.lt.s32.totalorder %s399_s29, %s393_s26 }
  0xb7   : > { %p396_p1 = pneg %p395_p0  ;;  %p402_p4 = por %p401_p3, %p400_p2 }
  0xb9   : > { %p403_p5 = pnand %p402_p4, %p396_p1 }
  0xbb   : > { %406 = shalt.err (!%p403_p5)
}
  0xbc   : > { %s407_s2 = scalar_lea.hbm %s562_s23, %s553_s12  ;;  %s411_s5 = scalar_lea.hbm %s605_s3, 48 }
  0xbd   : > { %p408_p7 = scmp.ne.s32.totalorder %s562_s23, %s407_s2  ;;  %p412_p10 = scmp.lt.u32.totalorder %s562_s23, %s605_s3 }
  0xbe   : > { %p413_p11 = scmp.lt.u32.totalorder %s411_s5, %s407_s2  ;;  %p415_p0 = scmp.lt.u32.totalorder %s407_s2, %s562_s23 }
  0xbf   : > { %p409_p8 = pnand %p408_p7, %p346_p12 }
  0xc0   : > { %p414_p13 = por %p413_p11, %p412_p10 }
  0xc1   : > { %p410_p9 = pneg %p409_p8 }
  0xc2   : > { %p416_p1 = por %p415_p0, %p414_p13 }
  0xc4   : > { %p417_p2 = pnand %p416_p1, %p410_p9 }
  0xc6   : > { %420 = shalt.err (!%p417_p2)
}
  0xc7   : > { %280 = dma.vmem_to_hbm [thread:$0]  (%p346_p12), %s278_s25, %s553_s12, %s562_s23, %s548_s10  }
  0xc8 PF: > { %p356_p3 = scmp.ge.s32.totalorder %s455_s17, 2  ;;  %s289_s8 = sand.u32 1, %s443_s14  }
  0xc9   : > { %s290_s9 = scalar_lea.sflag [#allocation4], %s289_s8 }
  0xca   : > { %p353_p4 = pnand %p356_p3, %p526_p6 }
  0xcc   : > { %438 = dma.done.wait (!%p353_p4), %s290_s9, 32  }
  0xcd   : > { %440 = vsyncadd (!%p353_p4), %s290_s9, 4294967264  ;;  %p14_p5 = scmp.ge.s32.totalorder %s509_s19, 4   ;;  %s608_s14 = smov %s447_s15 }
  0xce   : > { %s609_s15 = smov %s451_s16  ;;  %s610_s16 = smov %s520_s22 }
  0xcf   : > { %s611_s17 = smov %s509_s19  ;;  %16 = sbr.rel (!%p14_p5) target bundleno = 5 (0x5), region = 67 }
  0xd6   :  { %295 = vsyncpa [#allocation4], 1 }
  0xd7   :  { %297 = vsyncpa [#allocation4 + $0x1], 1 }

</bundles_post_ra>
